<compile_context>
chip_gen: v6e
topology: v6e:2x2x1
jax: 0.10.0
libtpu: 0.0.40
codegen_flags: <defaults>
</compile_context>

<pallas_src>
import math

import numpy as np
import jax
import jax.numpy as jnp
from jax.experimental import pallas as pl
from jax.experimental.pallas import tpu as pltpu

# ---------------- model hyperparameters (small, consistent with forward) ----
BATCH = 8
EMB_SIZE = 32            # emb_size of each PositionalEmbedding (sinusoidal)
HALF = EMB_SIZE // 2
HIDDEN = 32              # hidden_size
HIDDEN_LAYERS = 3        # number of residual Blocks
CONCAT = 3 * EMB_SIZE    # 96
OUT_DIM = 2
INPUT_SCALE = 25.0       # scale of the two input embeddings; time uses 1.0

# ---------------- lane-dense padded sizes -----------------------------------
LANE = 128
CONCAT_PAD = LANE        # 96  -> 128
HIDDEN_PAD = LANE        # 32  -> 128 (zero-padded weights keep math identical)
OUT_LANES = 8            # stored output lanes (only [:2] meaningful)

# Max rows per grid step (multiple of 8).  TB=1024 keeps live f32
# intermediates to a few MB — far under the scoped VMEM limit on v5e/v6e/v7x.
TILE_B_MAX = 1024

_FREQ_COEF = math.log(10000.0) / (HALF - 1)


def _gelu_exact(x):
    # PyTorch nn.GELU() default = exact (erf-based) GELU.
    return 0.5 * x * (1.0 + jax.lax.erf(x * (1.0 / math.sqrt(2.0))))


def _round_up(n, m):
    return ((n + m - 1) // m) * m


def _emb_consts():
    """Per-lane scale*frequency and sin-phase rows, computed exactly on host.

    Lane layout: [x1-emb 0:32 | x2-emb 32:64 | t-emb 64:96 | pad 96:128].
    Within each 32-lane group: lanes [0:16] are sin, [16:32] are cos
    (cos(a) == sin(a + pi/2)).  Pad lanes get freq=0 and phase=0 so the
    embedding there is exactly sin(0) == 0.
    """
    lane = np.arange(CONCAT_PAD)
    freq = np.exp(-_FREQ_COEF * (lane % HALF).astype(np.float64))
    scale = np.where(lane < 2 * EMB_SIZE, INPUT_SCALE, 1.0)
    valid = lane < CONCAT
    fs = np.where(valid, freq * scale, 0.0).astype(np.float32)[None, :]
    ph = np.where(valid & ((lane % EMB_SIZE) >= HALF),
                  np.pi / 2.0, 0.0).astype(np.float32)[None, :]
    return jnp.asarray(fs), jnp.asarray(ph)


# ---------------- Pallas kernel: embeddings + whole joint_mlp ----------------
def joint_mlp_kernel(xt_ref, fs_ref, ph_ref, w0_ref, b0_ref, wb_ref, bb_ref,
                     wo_ref, bo_ref, out_ref):
    # xt: [TB, 3] (x1, x2, t);  fs/ph: [1, 128] (scale*freq, sin-phase)
    # w0: [128, 128];  b0: [1, 128];  wb: [L, 128, 128];  bb: [L, 1, 128]
    # wo: [128, 128];  bo: [1, 128];  out: [TB, 8]  (lanes [:2] meaningful)

    # ---- fused sinusoidal embeddings (sin only; cos folded via +pi/2) -------
    lane = jax.lax.broadcasted_iota(jnp.int32, (1, CONCAT_PAD), 1)       # [1,128]
    x1 = xt_ref[:, 0:1]                                                  # [TB,1]
    x2 = xt_ref[:, 1:2]
    tt = xt_ref[:, 2:3]
    v = jnp.where(lane < EMB_SIZE, x1,
                  jnp.where(lane < 2 * EMB_SIZE, x2, tt))                # [TB,128]
    emb = jnp.sin(v * fs_ref[...] + ph_ref[...])      # pad lanes: sin(0) == 0

    # ---- joint MLP: Linear + GELU, residual Blocks, output Linear -----------
    h = jnp.dot(emb, w0_ref[...], preferred_element_type=jnp.float32) + b0_ref[...]
    h = _gelu_exact(h)
    for l in range(HIDDEN_LAYERS):       # tiny + sequentially dependent: unroll
        ff = jnp.dot(h, wb_ref[l], preferred_element_type=jnp.float32) + bb_ref[l]
        h = h + _gelu_exact(ff)
    out = jnp.dot(h, wo_ref[...], preferred_element_type=jnp.float32) + bo_ref[...]
    # Narrow, lane-masked store: only 8 of 128 computed lanes hit HBM.
    out_ref[...] = out[:, :OUT_LANES].astype(out_ref.dtype)


# ---------------- one-time weight padding to lane-dense shapes ---------------
def pad_params(params):
    w0, b0, wb, bb, wo, bo = params
    w0p = jnp.pad(w0, ((0, CONCAT_PAD - CONCAT), (0, HIDDEN_PAD - HIDDEN)))
    b0p = jnp.pad(b0, ((0, 0), (0, HIDDEN_PAD - HIDDEN)))
    wbp = jnp.pad(wb, ((0, 0), (0, HIDDEN_PAD - HIDDEN), (0, HIDDEN_PAD - HIDDEN)))
    bbp = jnp.pad(bb, ((0, 0), (0, 0), (0, HIDDEN_PAD - HIDDEN)))
    # Output weights stay 128-wide for the MXU; only 8 lanes are stored.
    wop = jnp.pad(wo, ((0, HIDDEN_PAD - HIDDEN), (0, LANE - OUT_DIM)))
    bop = jnp.pad(bo, ((0, 0), (0, LANE - OUT_DIM)))
    return w0p, b0p, wbp, bbp, wop, bop


# ---------------- tile selection ---------------------------------------------
def _choose_tile_b(batch):
    bp8 = _round_up(batch, 8)
    if bp8 <= 8:
        return bp8
    # Prefer >= 2 grid steps so v7x's two TensorCores both get work under
    # dimension_semantics=("parallel",); cap at TILE_B_MAX to amortize the
    # ~0.35 us per-grid-step overhead without blowing scoped VMEM.
    tb = _round_up((bp8 + 1) // 2, 8)
    return min(tb, TILE_B_MAX)


# ---------------- wrapper ----------------------------------------------------
@jax.jit
def mlp_forward(x, t, padded_params):
    w0p, b0p, wbp, bbp, wop, bop = padded_params
    B = x.shape[0]
    TB = _choose_tile_b(B)
    Bp = _round_up(B, TB)

    xt = jnp.concatenate([x, t[:, None]], axis=-1).astype(jnp.float32)   # [B,3]
    if Bp != B:
        xt = jnp.pad(xt, ((0, Bp - B), (0, 0)))
    fs, ph = _emb_consts()

    out = pl.pallas_call(
        joint_mlp_kernel,
        out_shape=jax.ShapeDtypeStruct((Bp, OUT_LANES), jnp.float32),
        grid=(Bp // TB,),
        in_specs=[
            pl.BlockSpec((TB, 3), lambda i: (i, 0)),
            # constants + weights/biases: constant index_map -> VMEM-resident
            pl.BlockSpec((1, CONCAT_PAD), lambda i: (0, 0)),
            pl.BlockSpec((1, CONCAT_PAD), lambda i: (0, 0)),
            pl.BlockSpec((CONCAT_PAD, HIDDEN_PAD), lambda i: (0, 0)),
            pl.BlockSpec((1, HIDDEN_PAD), lambda i: (0, 0)),
            pl.BlockSpec((HIDDEN_LAYERS, HIDDEN_PAD, HIDDEN_PAD),
                         lambda i: (0, 0, 0)),
            pl.BlockSpec((HIDDEN_LAYERS, 1, HIDDEN_PAD), lambda i: (0, 0, 0)),
            pl.BlockSpec((HIDDEN_PAD, LANE), lambda i: (0, 0)),
            pl.BlockSpec((1, LANE), lambda i: (0, 0)),
        ],
        out_specs=pl.BlockSpec((TB, OUT_LANES), lambda i: (i, 0)),
        compiler_params=pltpu.CompilerParams(
            dimension_semantics=("parallel",)),
    )(xt, fs, ph, w0p, b0p, wbp, bbp, wop, bop)

    return out[:B, :OUT_DIM]


# ---------------- pure-JAX reference (correctness check) ---------------------
def sinusoidal_embedding(x, size, scale):
    x = x * scale
    half = size // 2
    freqs = jnp.exp(-(math.log(10000.0) / (half - 1))
                    * jnp.arange(half, dtype=jnp.float32))
    ang = x[:, None] * freqs[None, :]
    return jnp.concatenate([jnp.sin(ang), jnp.cos(ang)], axis=-1)


def mlp_forward_ref(x, t, params):
    w0, b0, wb, bb, wo, bo = params
    x1_emb = sinusoidal_embedding(x[:, 0], EMB_SIZE, 25.0)
    x2_emb = sinusoidal_embedding(x[:, 1], EMB_SIZE, 25.0)
    t_emb = sinusoidal_embedding(t, EMB_SIZE, 1.0)
    h = jnp.concatenate([x1_emb, x2_emb, t_emb], axis=-1)
    h = _gelu_exact(h @ w0 + b0)
    for l in range(HIDDEN_LAYERS):
        h = h + _gelu_exact(h @ wb[l] + bb[l])
    return h @ wo + bo


# ---------------- deterministic parameter init -------------------------------
def init_params(key):
    def linear(key, fan_in, fan_out):
        kw, kb = jax.random.split(key)
        bound = 1.0 / math.sqrt(fan_in)
        w = jax.random.uniform(kw, (fan_in, fan_out), jnp.float32, -bound, bound)
        b = jax.random.uniform(kb, (1, fan_out), jnp.float32, -bound, bound)
        return w, b

    keys = jax.random.split(key, 2 + HIDDEN_LAYERS)
    w0, b0 = linear(keys[0], CONCAT, HIDDEN)
    wbs, bbs = [], []
    for l in range(HIDDEN_LAYERS):
        w, b = linear(keys[1 + l], HIDDEN, HIDDEN)
        wbs.append(w)
        bbs.append(b)
    wb = jnp.stack(wbs, axis=0)               # [L, H, H]
    bb = jnp.stack(bbs, axis=0)               # [L, 1, H]
    wo, bo = linear(keys[-1], HIDDEN, OUT_DIM)
    return w0, b0, wb, bb, wo, bo


if __name__ == "__main__":
    key = jax.random.PRNGKey(0)
    kx, kt, kp = jax.random.split(key, 3)
    x = jax.random.normal(kx, (BATCH, 2), jnp.float32)
    t = jax.random.uniform(kt, (BATCH,), jnp.float32, 0.0, 50.0)
    params = init_params(kp)
    padded_params = pad_params(params)        # one-time weight padding

    out = jax.block_until_ready(mlp_forward(x, t, padded_params))
    ref = jax.block_until_ready(mlp_forward_ref(x, t, params))

    assert out.shape == (BATCH, OUT_DIM)
    # Embeddings are computed in-kernel (Mosaic sin with cos folded as a +pi/2
    # phase) vs XLA sin/cos in the reference; sin/cos arguments reach ~100 rad
    # so range-reduction differences justify a slightly loose f32 tolerance.
    max_diff = jnp.max(jnp.abs(out - ref))
    assert jnp.allclose(out, ref, rtol=1e-4, atol=2e-4), f"max diff {max_diff}"
    print("KERNEL_OK")
</pallas_src>

<mosaic_0001>
module attributes {stable_mosaic.version = 11 : i64} {
  func.func @joint_mlp_kernel(%arg0: i32, %arg1: memref<8x3xf32, #tpu.memory_space<vmem>>, %arg2: memref<1x128xf32, #tpu.memory_space<vmem>>, %arg3: memref<1x128xf32, #tpu.memory_space<vmem>>, %arg4: memref<128x128xf32, #tpu.memory_space<vmem>>, %arg5: memref<1x128xf32, #tpu.memory_space<vmem>>, %arg6: memref<3x128x128xf32, #tpu.memory_space<vmem>>, %arg7: memref<3x1x128xf32, #tpu.memory_space<vmem>>, %arg8: memref<128x128xf32, #tpu.memory_space<vmem>>, %arg9: memref<1x128xf32, #tpu.memory_space<vmem>>, %arg10: memref<8x8xf32, #tpu.memory_space<vmem>>) attributes {dimension_semantics = [#tpu.dimension_semantics<parallel>], iteration_bounds = array<i64: 1>, scalar_prefetch = 0 : i64, scratch_operands = 0 : i64, tpu.core_type = #tpu.core_type<tc>, window_params = [{transform_indices = @transform_0, window_bounds = array<i64: 8, 3>}, {pipeline_mode = #tpu.pipeline_mode<synchronous>, transform_indices = @transform_1, window_bounds = array<i64: 1, 128>}, {pipeline_mode = #tpu.pipeline_mode<synchronous>, transform_indices = @transform_2, window_bounds = array<i64: 1, 128>}, {pipeline_mode = #tpu.pipeline_mode<synchronous>, transform_indices = @transform_3, window_bounds = array<i64: 128, 128>}, {pipeline_mode = #tpu.pipeline_mode<synchronous>, transform_indices = @transform_4, window_bounds = array<i64: 1, 128>}, {pipeline_mode = #tpu.pipeline_mode<synchronous>, transform_indices = @transform_5, window_bounds = array<i64: 3, 128, 128>}, {pipeline_mode = #tpu.pipeline_mode<synchronous>, transform_indices = @transform_6, window_bounds = array<i64: 3, 1, 128>}, {pipeline_mode = #tpu.pipeline_mode<synchronous>, transform_indices = @transform_7, window_bounds = array<i64: 128, 128>}, {pipeline_mode = #tpu.pipeline_mode<synchronous>, transform_indices = @transform_8, window_bounds = array<i64: 1, 128>}, {transform_indices = @transform_9, window_bounds = array<i64: 8, 8>}]} {
    %0 = tpu.iota {dimensions = array<i32: 1>} : vector<1x128xi32>
    %c0 = arith.constant 0 : index
    %c0_0 = arith.constant 0 : index
    %1 = vector.load %arg1[%c0, %c0_0] : memref<8x3xf32, #tpu.memory_space<vmem>>, vector<8x1xf32>
    %c0_1 = arith.constant 0 : index
    %c1 = arith.constant 1 : index
    %2 = vector.load %arg1[%c0_1, %c1] : memref<8x3xf32, #tpu.memory_space<vmem>>, vector<8x1xf32>
    %c0_2 = arith.constant 0 : index
    %c2 = arith.constant 2 : index
    %3 = vector.load %arg1[%c0_2, %c2] : memref<8x3xf32, #tpu.memory_space<vmem>>, vector<8x1xf32>
    %c32_i32 = arith.constant 32 : i32
    %4 = vector.broadcast %c32_i32 : i32 to vector<1x128xi32>
    %5 = arith.cmpi slt, %0, %4 : vector<1x128xi32>
    %c64_i32 = arith.constant 64 : i32
    %6 = vector.broadcast %c64_i32 : i32 to vector<1x128xi32>
    %7 = arith.cmpi slt, %0, %6 : vector<1x128xi32>
    %8 = vector.shape_cast %7 : vector<1x128xi1> to vector<1x128xi1>
    %9 = vector.broadcast %8 : vector<1x128xi1> to vector<8x128xi1>
    %10 = vector.shape_cast %2 : vector<8x1xf32> to vector<8x1xf32>
    %11 = vector.broadcast %10 : vector<8x1xf32> to vector<8x128xf32>
    %12 = vector.shape_cast %3 : vector<8x1xf32> to vector<8x1xf32>
    %13 = vector.broadcast %12 : vector<8x1xf32> to vector<8x128xf32>
    %14 = arith.select %9, %11, %13 : vector<8x128xi1>, vector<8x128xf32>
    %15 = vector.shape_cast %5 : vector<1x128xi1> to vector<1x128xi1>
    %16 = vector.broadcast %15 : vector<1x128xi1> to vector<8x128xi1>
    %17 = vector.shape_cast %1 : vector<8x1xf32> to vector<8x1xf32>
    %18 = vector.broadcast %17 : vector<8x1xf32> to vector<8x128xf32>
    %19 = arith.select %16, %18, %14 : vector<8x128xi1>, vector<8x128xf32>
    %c0_3 = arith.constant 0 : index
    %c0_4 = arith.constant 0 : index
    %20 = vector.load %arg2[%c0_3, %c0_4] : memref<1x128xf32, #tpu.memory_space<vmem>>, vector<1x128xf32>
    %21 = vector.broadcast %20 : vector<1x128xf32> to vector<8x128xf32>
    %22 = arith.mulf %19, %21 : vector<8x128xf32>
    %c0_5 = arith.constant 0 : index
    %c0_6 = arith.constant 0 : index
    %23 = vector.load %arg3[%c0_5, %c0_6] : memref<1x128xf32, #tpu.memory_space<vmem>>, vector<1x128xf32>
    %24 = vector.broadcast %23 : vector<1x128xf32> to vector<8x128xf32>
    %25 = arith.addf %22, %24 : vector<8x128xf32>
    %26 = math.sin %25 : vector<8x128xf32>
    %c0_7 = arith.constant 0 : index
    %c0_8 = arith.constant 0 : index
    %27 = vector.load %arg4[%c0_7, %c0_8] : memref<128x128xf32, #tpu.memory_space<vmem>>, vector<128x128xf32>
    %cst = arith.constant dense<0.000000e+00> : vector<8x128xf32>
    %28 = tpu.matmul %26, %27, %cst {dimension_numbers = #tpu.dot_dimension_numbers<[1], [0], [0], [1], [0, 0, 1, 1], [], []>} : vector<8x128xf32>, vector<128x128xf32>, vector<8x128xf32> -> vector<8x128xf32>
    %c0_9 = arith.constant 0 : index
    %c0_10 = arith.constant 0 : index
    %29 = vector.load %arg5[%c0_9, %c0_10] : memref<1x128xf32, #tpu.memory_space<vmem>>, vector<1x128xf32>
    %30 = vector.broadcast %29 : vector<1x128xf32> to vector<8x128xf32>
    %31 = arith.addf %28, %30 : vector<8x128xf32>
    %cst_11 = arith.constant 5.000000e-01 : f32
    %32 = vector.broadcast %cst_11 : f32 to vector<8x128xf32>
    %33 = arith.mulf %32, %31 : vector<8x128xf32>
    %cst_12 = arith.constant 0.707106769 : f32
    %34 = vector.broadcast %cst_12 : f32 to vector<8x128xf32>
    %35 = arith.mulf %31, %34 : vector<8x128xf32>
    %36 = math.erf %35 : vector<8x128xf32>
    %cst_13 = arith.constant 1.000000e+00 : f32
    %37 = vector.broadcast %cst_13 : f32 to vector<8x128xf32>
    %38 = arith.addf %37, %36 : vector<8x128xf32>
    %39 = arith.mulf %33, %38 : vector<8x128xf32>
    %c0_14 = arith.constant 0 : index
    %c0_15 = arith.constant 0 : index
    %c0_16 = arith.constant 0 : index
    %40 = vector.load %arg6[%c0_14, %c0_15, %c0_16] : memref<3x128x128xf32, #tpu.memory_space<vmem>>, vector<1x128x128xf32>
    %41 = vector.shape_cast %40 : vector<1x128x128xf32> to vector<128x128xf32>
    %cst_17 = arith.constant dense<0.000000e+00> : vector<8x128xf32>
    %42 = tpu.matmul %39, %41, %cst_17 {dimension_numbers = #tpu.dot_dimension_numbers<[1], [0], [0], [1], [0, 0, 1, 1], [], []>} : vector<8x128xf32>, vector<128x128xf32>, vector<8x128xf32> -> vector<8x128xf32>
    %c0_18 = arith.constant 0 : index
    %c0_19 = arith.constant 0 : index
    %c0_20 = arith.constant 0 : index
    %43 = vector.load %arg7[%c0_18, %c0_19, %c0_20] : memref<3x1x128xf32, #tpu.memory_space<vmem>>, vector<1x1x128xf32>
    %44 = vector.shape_cast %43 : vector<1x1x128xf32> to vector<1x128xf32>
    %45 = vector.broadcast %44 : vector<1x128xf32> to vector<8x128xf32>
    %46 = arith.addf %42, %45 : vector<8x128xf32>
    %cst_21 = arith.constant 5.000000e-01 : f32
    %47 = vector.broadcast %cst_21 : f32 to vector<8x128xf32>
    %48 = arith.mulf %47, %46 : vector<8x128xf32>
    %cst_22 = arith.constant 0.707106769 : f32
    %49 = vector.broadcast %cst_22 : f32 to vector<8x128xf32>
    %50 = arith.mulf %46, %49 : vector<8x128xf32>
    %51 = math.erf %50 : vector<8x128xf32>
    %cst_23 = arith.constant 1.000000e+00 : f32
    %52 = vector.broadcast %cst_23 : f32 to vector<8x128xf32>
    %53 = arith.addf %52, %51 : vector<8x128xf32>
    %54 = arith.mulf %48, %53 : vector<8x128xf32>
    %55 = arith.addf %39, %54 : vector<8x128xf32>
    %c1_24 = arith.constant 1 : index
    %c0_25 = arith.constant 0 : index
    %c0_26 = arith.constant 0 : index
    %56 = vector.load %arg6[%c1_24, %c0_25, %c0_26] : memref<3x128x128xf32, #tpu.memory_space<vmem>>, vector<1x128x128xf32>
    %57 = vector.shape_cast %56 : vector<1x128x128xf32> to vector<128x128xf32>
    %cst_27 = arith.constant dense<0.000000e+00> : vector<8x128xf32>
    %58 = tpu.matmul %55, %57, %cst_27 {dimension_numbers = #tpu.dot_dimension_numbers<[1], [0], [0], [1], [0, 0, 1, 1], [], []>} : vector<8x128xf32>, vector<128x128xf32>, vector<8x128xf32> -> vector<8x128xf32>
    %c1_28 = arith.constant 1 : index
    %c0_29 = arith.constant 0 : index
    %c0_30 = arith.constant 0 : index
    %59 = vector.load %arg7[%c1_28, %c0_29, %c0_30] : memref<3x1x128xf32, #tpu.memory_space<vmem>>, vector<1x1x128xf32>
    %60 = vector.shape_cast %59 : vector<1x1x128xf32> to vector<1x128xf32>
    %61 = vector.broadcast %60 : vector<1x128xf32> to vector<8x128xf32>
    %62 = arith.addf %58, %61 : vector<8x128xf32>
    %cst_31 = arith.constant 5.000000e-01 : f32
    %63 = vector.broadcast %cst_31 : f32 to vector<8x128xf32>
    %64 = arith.mulf %63, %62 : vector<8x128xf32>
    %cst_32 = arith.constant 0.707106769 : f32
    %65 = vector.broadcast %cst_32 : f32 to vector<8x128xf32>
    %66 = arith.mulf %62, %65 : vector<8x128xf32>
    %67 = math.erf %66 : vector<8x128xf32>
    %cst_33 = arith.constant 1.000000e+00 : f32
    %68 = vector.broadcast %cst_33 : f32 to vector<8x128xf32>
    %69 = arith.addf %68, %67 : vector<8x128xf32>
    %70 = arith.mulf %64, %69 : vector<8x128xf32>
    %71 = arith.addf %55, %70 : vector<8x128xf32>
    %c2_34 = arith.constant 2 : index
    %c0_35 = arith.constant 0 : index
    %c0_36 = arith.constant 0 : index
    %72 = vector.load %arg6[%c2_34, %c0_35, %c0_36] : memref<3x128x128xf32, #tpu.memory_space<vmem>>, vector<1x128x128xf32>
    %73 = vector.shape_cast %72 : vector<1x128x128xf32> to vector<128x128xf32>
    %cst_37 = arith.constant dense<0.000000e+00> : vector<8x128xf32>
    %74 = tpu.matmul %71, %73, %cst_37 {dimension_numbers = #tpu.dot_dimension_numbers<[1], [0], [0], [1], [0, 0, 1, 1], [], []>} : vector<8x128xf32>, vector<128x128xf32>, vector<8x128xf32> -> vector<8x128xf32>
    %c2_38 = arith.constant 2 : index
    %c0_39 = arith.constant 0 : index
    %c0_40 = arith.constant 0 : index
    %75 = vector.load %arg7[%c2_38, %c0_39, %c0_40] : memref<3x1x128xf32, #tpu.memory_space<vmem>>, vector<1x1x128xf32>
    %76 = vector.shape_cast %75 : vector<1x1x128xf32> to vector<1x128xf32>
    %77 = vector.broadcast %76 : vector<1x128xf32> to vector<8x128xf32>
    %78 = arith.addf %74, %77 : vector<8x128xf32>
    %cst_41 = arith.constant 5.000000e-01 : f32
    %79 = vector.broadcast %cst_41 : f32 to vector<8x128xf32>
    %80 = arith.mulf %79, %78 : vector<8x128xf32>
    %cst_42 = arith.constant 0.707106769 : f32
    %81 = vector.broadcast %cst_42 : f32 to vector<8x128xf32>
    %82 = arith.mulf %78, %81 : vector<8x128xf32>
    %83 = math.erf %82 : vector<8x128xf32>
    %cst_43 = arith.constant 1.000000e+00 : f32
    %84 = vector.broadcast %cst_43 : f32 to vector<8x128xf32>
    %85 = arith.addf %84, %83 : vector<8x128xf32>
    %86 = arith.mulf %80, %85 : vector<8x128xf32>
    %87 = arith.addf %71, %86 : vector<8x128xf32>
    %c0_44 = arith.constant 0 : index
    %c0_45 = arith.constant 0 : index
    %88 = vector.load %arg8[%c0_44, %c0_45] : memref<128x128xf32, #tpu.memory_space<vmem>>, vector<128x128xf32>
    %cst_46 = arith.constant dense<0.000000e+00> : vector<8x128xf32>
    %89 = tpu.matmul %87, %88, %cst_46 {dimension_numbers = #tpu.dot_dimension_numbers<[1], [0], [0], [1], [0, 0, 1, 1], [], []>} : vector<8x128xf32>, vector<128x128xf32>, vector<8x128xf32> -> vector<8x128xf32>
    %c0_47 = arith.constant 0 : index
    %c0_48 = arith.constant 0 : index
    %90 = vector.load %arg9[%c0_47, %c0_48] : memref<1x128xf32, #tpu.memory_space<vmem>>, vector<1x128xf32>
    %91 = vector.broadcast %90 : vector<1x128xf32> to vector<8x128xf32>
    %92 = arith.addf %89, %91 : vector<8x128xf32>
    %93 = vector.extract_strided_slice %92 {offsets = [0, 0], sizes = [8, 8], strides = [1, 1]} : vector<8x128xf32> to vector<8x8xf32>
    %c0_49 = arith.constant 0 : index
    %c0_50 = arith.constant 0 : index
    %94 = vector.load %arg10[%c0_49, %c0_50] : memref<8x8xf32, #tpu.memory_space<vmem>>, vector<8x8xf32>
    tpu.vector_store %arg10[%c0_49, %c0_50], %93 {strides = array<i32>} : memref<8x8xf32, #tpu.memory_space<vmem>>, vector<8x8xf32>,
    return
  }
  func.func @transform_0(%arg0: i32) -> (i32, i32) {
    %c0_i32 = arith.constant 0 : i32
    %c0_i32_0 = arith.constant 0 : i32
    return %arg0, %c0_i32 : i32, i32
  }
  func.func @transform_1(%arg0: i32) -> (i32, i32) {
    %c0_i32 = arith.constant 0 : i32
    %c0_i32_0 = arith.constant 0 : i32
    %c0_i32_1 = arith.constant 0 : i32
    return %c0_i32, %c0_i32_0 : i32, i32
  }
  func.func @transform_2(%arg0: i32) -> (i32, i32) {
    %c0_i32 = arith.constant 0 : i32
    %c0_i32_0 = arith.constant 0 : i32
    %c0_i32_1 = arith.constant 0 : i32
    return %c0_i32, %c0_i32_0 : i32, i32
  }
  func.func @transform_3(%arg0: i32) -> (i32, i32) {
    %c0_i32 = arith.constant 0 : i32
    %c0_i32_0 = arith.constant 0 : i32
    %c0_i32_1 = arith.constant 0 : i32
    return %c0_i32, %c0_i32_0 : i32, i32
  }
  func.func @transform_4(%arg0: i32) -> (i32, i32) {
    %c0_i32 = arith.constant 0 : i32
    %c0_i32_0 = arith.constant 0 : i32
    %c0_i32_1 = arith.constant 0 : i32
    return %c0_i32, %c0_i32_0 : i32, i32
  }
  func.func @transform_5(%arg0: i32) -> (i32, i32, i32) {
    %c0_i32 = arith.constant 0 : i32
    %c0_i32_0 = arith.constant 0 : i32
    %c0_i32_1 = arith.constant 0 : i32
    %c0_i32_2 = arith.constant 0 : i32
    return %c0_i32, %c0_i32_0, %c0_i32_1 : i32, i32, i32
  }
  func.func @transform_6(%arg0: i32) -> (i32, i32, i32) {
    %c0_i32 = arith.constant 0 : i32
    %c0_i32_0 = arith.constant 0 : i32
    %c0_i32_1 = arith.constant 0 : i32
    %c0_i32_2 = arith.constant 0 : i32
    return %c0_i32, %c0_i32_0, %c0_i32_1 : i32, i32, i32
  }
  func.func @transform_7(%arg0: i32) -> (i32, i32) {
    %c0_i32 = arith.constant 0 : i32
    %c0_i32_0 = arith.constant 0 : i32
    %c0_i32_1 = arith.constant 0 : i32
    return %c0_i32, %c0_i32_0 : i32, i32
  }
  func.func @transform_8(%arg0: i32) -> (i32, i32) {
    %c0_i32 = arith.constant 0 : i32
    %c0_i32_0 = arith.constant 0 : i32
    %c0_i32_1 = arith.constant 0 : i32
    return %c0_i32, %c0_i32_0 : i32, i32
  }
  func.func @transform_9(%arg0: i32) -> (i32, i32) {
    %c0_i32 = arith.constant 0 : i32
    %c0_i32_0 = arith.constant 0 : i32
    return %arg0, %c0_i32 : i32, i32
  }
}

</mosaic_0001>

<bundles_post_ra>
// kernel: mlp_forward.1
= control target key start
LH: loop header
LB: loop body
LE: loop exit
PB: predicated region body
PF: predicated region fallthrough
CT: control target
= control target key end

     0   :  { %14 = vsyncpa [#allocation3], 0  ;;  %s1303_s0 = inlined_call_operand.vmem [shape: f32[8,3], index: 0, kind: input, shape index: {}]   ;;  %s1304_s1 = inlined_call_operand.vmem [shape: f32[1,128], index: 1, kind: input, shape index: {}]   ;;  %s1305_s2 = inlined_call_operand.vmem [shape: f32[1,128], index: 2, kind: input, shape index: {}]   ;;  %s1306_s3 = inlined_call_operand.hbm [shape: f32[128,128], index: 3, kind: input, shape index: {}]   ;;  %s1307_s4 = inlined_call_operand.vmem [shape: f32[1,128], index: 4, kind: input, shape index: {}]   ;;  %s1308_s5 = inlined_call_operand.hbm [shape: f32[3,128,128], index: 5, kind: input, shape index: {}]   ;;  %s1309_s6 = inlined_call_operand.vmem [shape: f32[3,1,128], index: 6, kind: input, shape index: {}]   ;;  %s1310_s7 = inlined_call_operand.hbm [shape: f32[128,128], index: 7, kind: input, shape index: {}]   ;;  %s1311_s8 = inlined_call_operand.vmem [shape: f32[1,128], index: 8, kind: input, shape index: {}]   ;;  %s1312_s9 = inlined_call_operand.vmem [shape: f32[8,8], index: 9, kind: output, shape index: {}]  }
   0x1   :  { %15 = vsyncpa [#allocation5], 0  ;;  %s1090_s30 = smov [#allocation4]   ;;  %s1091_s11 = smov [#allocation2]  }
   0x2   :  { %s41_s10 = sshll.u32 %s1090_s30, 4  ;;  %s27_s12 = sshll.u32 %s1091_s11, 4  ;;  %s42_s10 = int_to_ptr.vmem [resolvable:$true] %s41_s10  ;;  %s28_s12 = int_to_ptr.vmem [resolvable:$true] %s27_s12 }
   0x3   :  { %s1034_s13 = scalar_lea.vmem %s42_s10, 6144  ;;  %p1039_p1 = scmp.lt.s32.totalorder %s42_s10, %s42_s10 }
   0x4   :  { %p1035_p0 = scmp.ne.s32.totalorder %s42_s10, %s1034_s13  ;;  %p1040_p2 = scmp.lt.s32.totalorder %s1034_s13, %s1034_s13 }
   0x6   :  { %p1041_p3 = por %p1040_p2, %p1039_p1 }
   0x8   :  { %p1042_p4 = pnand %p1041_p3, %p1035_p0 }
   0xa   :  { %1045 = shalt.err (!%p1042_p4)
}
   0xb   :  { %s1092_s14 = smov 128   ;;  %s1093_s15 = smov 8  }
   0xc   :  { %47 = dma.hbm_to_vmem [thread:$0]  %s1308_s5, 6144, %s42_s10, [#allocation5], %s1092_s14, %s1092_s14, %s1093_s15  }
   0xd   :  { %s1054_s18 = scalar_lea.vmem %s28_s12, 2048  ;;  %p1059_p6 = scmp.lt.s32.totalorder %s28_s12, %s28_s12 }
   0xe   :  { %p1055_p5 = scmp.ne.s32.totalorder %s28_s12, %s1054_s18  ;;  %p1060_p7 = scmp.lt.s32.totalorder %s1054_s18, %s1054_s18 }
  0x10   :  { %p1061_p8 = por %p1060_p7, %p1059_p6 }
  0x12   :  { %p1062_p9 = pnand %p1061_p8, %p1055_p5 }
  0x14   :  { %1065 = shalt.err (!%p1062_p9)
}
  0x15   :  { %33 = dma.hbm_to_vmem [thread:$0]  %s1306_s3, 2048, %s28_s12, [#allocation3], %s1092_s14, %s1092_s14, %s1093_s15  }
  0x16   :  { %s1094_s21 = smov [#allocation6]  }
  0x17   :  { %s55_s22 = sshll.u32 %s1094_s21, 4  ;;  %s56_s22 = int_to_ptr.vmem [resolvable:$true] %s55_s22 }
  0x18   :  { %s1074_s23 = scalar_lea.vmem %s56_s22, 2048  ;;  %p1079_p11 = scmp.lt.s32.totalorder %s56_s22, %s56_s22 }
  0x19   :  { %p1075_p10 = scmp.ne.s32.totalorder %s56_s22, %s1074_s23  ;;  %p1080_p12 = scmp.lt.s32.totalorder %s1074_s23, %s1074_s23 }
  0x1b   :  { %p1081_p13 = por %p1080_p12, %p1079_p11 }
  0x1d   :  { %p1082_p0 = pnand %p1081_p13, %p1075_p10 }
  0x1f   :  { %1085 = shalt.err (!%p1082_p0)
}
  0x20   :  { %61 = dma.hbm_to_vmem [thread:$0]  %s1310_s7, 2048, %s56_s22, [#allocation5], %s1092_s14, %s1092_s14, %s1093_s15  }
  0x21   :  { %1086 = dma.done.wait [#allocation3], 2048  }
  0x22   :  { %1087 = vsyncadd [#allocation3], 4294965248 }
  0x23   :  { %1088 = dma.done.wait [#allocation5], 8192  }
  0x24   :  { %1089 = vsyncadd [#allocation5], 4294959104  ;;  %v1095_v0 = vmov 1   ;;  %v1096_v1 = vmov 0   ;;  %v75_v2 = vld [vmem:[%s1303_s0] sm:$0xff]  ;;  %v1097_v3 = vmov 2   ;;  %v73_v25 = vlaneseq }
  0x25   :  { %1010 = vset.pattern.permute.xlu0 %v1095_v0  ;;  %1012 = vset.pattern.permute.xlu1 %v1096_v1  ;;  %v232_v4 = vld [vmem:[#allocation2 + $0x78] sm:$0xff]  ;;  %v1098_v5 = vmov 0.0   ;;  %v231_v6 = vld [vmem:[#allocation2 + $0x70] sm:$0xff]  ;;  %vm1099_vm0 = vmmov 0   ;;  %v230_v7 = vld [vmem:[#allocation2 + $0x68] sm:$0xff] }
  0x26   :  { %82 = vperm.xlu0 %1010, %v75_v2   ;;  %93 = vperm.xlu1 %1012, %v75_v2   ;;  %v229_v8 = vld [vmem:[#allocation2 + $0x60] sm:$0xff]  ;;  %v228_v9 = vld [vmem:[#allocation2 + $0x58] sm:$0xff]  ;;  %v227_v10 = vld [vmem:[#allocation2 + $0x50] sm:$0xff]  ;;  %v74_v26 = vand.u32 127, %v73_v25  ;;  %v1100_v46 = vmov 683565275  }
  0x27   :  { %815 = vmatprep.subr.mxu0 %v1098_v5  ;;  %847 = vmatprep.mubr.msk.f32.mxu0 %vm1099_vm0, %v1098_v5  ;;  %v226_v11 = vld [vmem:[#allocation2 + $0x48] sm:$0xff]  ;;  %v225_v12 = vld [vmem:[#allocation2 + $0x40] sm:$0xff]  ;;  %v224_v13 = vld [vmem:[#allocation2 + $0x38] sm:$0xff]  ;;  %v1101_v48 = vmov 2475754826  }
  0x28   :  { %816 = vmatpush3.msra.mxu0 %v232_v4  ;;  %850 = vmatprep.subr.mxu1 %v1098_v5  ;;  %v223_v14 = vld [vmem:[#allocation2 + $0x30] sm:$0xff]  ;;  %v222_v15 = vld [vmem:[#allocation2 + $0x28] sm:$0xff]  ;;  %v221_v16 = vld [vmem:[#allocation2 + $0x20] sm:$0xff]  ;;  %vm77_vm1 = vcmp.lt.s32.totalorder %v74_v26, 64  ;;  %vm76_vm2 = vcmp.lt.s32.totalorder %v74_v26, 32 }
  0x29   :  { %817 = vmatprep.subr.mxu0 %v1098_v5  ;;  %882 = vmatprep.mubr.msk.f32.mxu1 %vm1099_vm0, %v1098_v5  ;;  %v220_v17 = vld [vmem:[#allocation2 + $0x18] sm:$0xff]  ;;  %v219_v18 = vld [vmem:[#allocation2 + $0x10] sm:$0xff]  ;;  %v218_v19 = vld [vmem:[#allocation2 + $0x8] sm:$0xff]  ;;  %v1102_v51 = vmov 2131351028  }
  0x2a   :  { %1011 = vset.pattern.permute.xlu0 %v1097_v3  ;;  %818 = vmatpush3.msra.mxu0 %v231_v6  ;;  %v217_v20 = vld [vmem:[#allocation2] sm:$0xff]  ;;  %v330_v21 = vld [vmem:[#allocation4 + $0x78] sm:$0xff]  ;;  %v329_v22 = vld [vmem:[#allocation4 + $0x70] sm:$0xff]  ;;  %v1103_v54 = vmov 2102212464  }
  0x2b   :  { %86 = vperm.xlu0 %1011, %v75_v2   ;;  %819 = vmatprep.subr.mxu0 %v1098_v5  ;;  %v328_v23 = vld [vmem:[#allocation4 + $0x68] sm:$0xff]  ;;  %v327_v24 = vld [vmem:[#allocation4 + $0x60] sm:$0xff]  ;;  %v1104_v57 = vmov 920167782   ;;  %v1105_v60 = vmov 1326507024  }
  0x2c   :  { %820 = vmatpush3.msra.mxu0 %v230_v7  ;;  %851 = vmatpush3.msra.mxu1 %v330_v21  ;;  %v717_v30 = vld [vmem:[%s1304_s1] ss:$0 sm:$0xff] }
  0x2d   :  { %821 = vmatprep.subr.mxu0 %v1098_v5  ;;  %852 = vmatprep.subr.mxu1 %v1098_v5  ;;  %v718_v32 = vld [vmem:[%s1305_s2] ss:$0 sm:$0xff] }
  0x2e   :  { %822 = vmatpush3.msra.mxu0 %v229_v8  ;;  %853 = vmatpush3.msra.mxu1 %v329_v22 }
  0x2f   :  { %1013 = vset.pattern.permute.xlu0 %v1096_v1  ;;  %823 = vmatprep.subr.mxu0 %v1098_v5 }
  0x30   :  { %824 = vmatpush3.msra.mxu0 %v228_v9  ;;  %854 = vmatprep.subr.mxu1 %v1098_v5 }
  0x31   :  { %825 = vmatprep.subr.mxu0 %v1098_v5  ;;  %855 = vmatpush3.msra.mxu1 %v328_v23 }
  0x32   :  { %826 = vmatpush3.msra.mxu0 %v227_v10  ;;  %856 = vmatprep.subr.mxu1 %v1098_v5 }
  0x33   :  { %827 = vmatprep.subr.mxu0 %v1098_v5  ;;  %857 = vmatpush3.msra.mxu1 %v327_v24 }
  0x34   :  { %828 = vmatpush3.msra.mxu0 %v226_v11  ;;  %858 = vmatprep.subr.mxu1 %v1098_v5 }
  0x35   :  { %829 = vmatprep.subr.mxu0 %v1098_v5 }
  0x36   :  { %830 = vmatpush3.msra.mxu0 %v225_v12 }
  0x37   :  { %831 = vmatprep.subr.mxu0 %v1098_v5 }
  0x38   :  { %832 = vmatpush3.msra.mxu0 %v224_v13 }
  0x39   :  { %833 = vmatprep.subr.mxu0 %v1098_v5 }
  0x3a   :  { %834 = vmatpush3.msra.mxu0 %v223_v14 }
  0x3b   :  { %835 = vmatprep.subr.mxu0 %v1098_v5 }
  0x3c   :  { %836 = vmatpush3.msra.mxu0 %v222_v15 }
  0x3d   :  { %837 = vmatprep.subr.mxu0 %v1098_v5 }
  0x3e   :  { %838 = vmatpush3.msra.mxu0 %v221_v16 }
  0x3f   :  { %839 = vmatprep.subr.mxu0 %v1098_v5 }
  0x40   :  { %840 = vmatpush3.msra.mxu0 %v220_v17 }
  0x41   :  { %841 = vmatprep.subr.mxu0 %v1098_v5 }
  0x42   :  { %842 = vmatpush3.msra.mxu0 %v219_v18 }
  0x43   :  { %843 = vmatprep.subr.mxu0 %v1098_v5 }
  0x44   :  { %844 = vmatpush3.msra.mxu0 %v218_v19 }
  0x45   :  { %845 = vmatprep.subr.mxu0 %v1098_v5 }
  0x46   :  { %846 = vmatpush3.msra.mxu0 %v217_v20 }
  0x47   :  { %885 = vmatprep.subr.mxu0 %v1098_v5 }
  0xa1   :  { %v83_v27 = vpop.permute.xlu0 %82  ;;  %v94_v28 = vpop.permute.xlu1 %93 }
  0xa6   :  { %v87_v29 = vpop.permute.xlu0 %86 }
  0xa7   :  { %v89_v31 = vsel %vm77_vm1, %v83_v27, %v87_v29 }
  0xa8   :  { %v96_v33 = vsel %vm76_vm2, %v94_v28, %v89_v31 }
  0xa9   :  { %v104_v34 = vmul.f32 %v717_v30, %v96_v33 }
  0xab   :  { %v1200_v35 = vadd.f32 %v718_v32, %v104_v34 }
  0xad   :  { %v116_v36 = vand.u32 2139095040, %v1200_v35  ;;  %v113_v40 = vand.u32 2147483647, %v1200_v35  ;;  %vm115_vm10 = vcmp.lt.s32.totalorder %v1200_v35, 0  ;;  %vm205_vm15 = vweird.f32 %v1200_v35 }
  0xaf   :  { %v117_v37 = vshrl.u32 %v116_v36, 23  ;;  %v120_v44 = vand.u32 8388607, %v113_v40  ;;  %vm114_vm11 = vcmp.le.f32.partialorder %v113_v40, 0.7853982 }
  0xb1   :  { %v719_v38 = vadd.s32 4294967169, %v117_v37  ;;  %v121_v62 = vor.u32 8388608, %v120_v44 }
  0xb3   :  { %v123_v39 = vadd.s32 1, %v719_v38  ;;  %v161_v13 = vshll.u32 %v121_v62, 8 }
  0xb5   :  { %vm124_vm3 = vcmp.gt.s32.totalorder %v123_v39, 0 }
  0xb6   :  { %v125_v41 = vsel %vm124_vm3, %v123_v39, 0 }
  0xb7   :  { %v127_v42 = vand.u32 31, %v125_v41  ;;  %v126_v45 = vshrl.u32 %v125_v41, 5 }
  0xb9   :  { %v128_v43 = vsub.s32 32, %v127_v42  ;;  %v130_v47 = vshll.u32 %v1100_v46, %v127_v42  ;;  %v133_v49 = vshll.u32 %v1101_v48, %v127_v42  ;;  %v136_v53 = vshll.u32 %v1102_v51, %v127_v42 }
  0xba   :  { %v139_v56 = vshll.u32 %v1103_v54, %v127_v42  ;;  %v142_v59 = vshll.u32 %v1104_v57, %v127_v42  ;;  %vm145_vm4 = vcmp.lt.s32.totalorder %v126_v45, 1  ;;  %vm148_vm5 = vcmp.lt.s32.totalorder %v126_v45, 4 }
  0xbb   :  { %v131_v50 = vshrl.u32 %v1101_v48, %v128_v43  ;;  %v134_v52 = vshrl.u32 %v1102_v51, %v128_v43  ;;  %v137_v55 = vshrl.u32 %v1103_v54, %v128_v43  ;;  %v140_v58 = vshrl.u32 %v1104_v57, %v128_v43 }
  0xbc   :  { %v143_v61 = vshrl.u32 %v1105_v60, %v128_v43  ;;  %v129_v8 = vshrl.u32 %v1100_v46, %v128_v43  ;;  %vm147_vm6 = vcmp.lt.s32.totalorder %v126_v45, 3  ;;  %vm146_vm7 = vcmp.lt.s32.totalorder %v126_v45, 2 }
  0xbd   :  { %v132_v63 = vor.u32 %v131_v50, %v130_v47  ;;  %v135_v0 = vor.u32 %v134_v52, %v133_v49  ;;  %v138_v1 = vor.u32 %v137_v55, %v136_v53  ;;  %v141_v2 = vor.u32 %v140_v58, %v139_v56 }
  0xbe   :  { %v144_v3 = vor.u32 %v143_v61, %v142_v59 }
  0xbf   :  { %v150_v4 = vsel %vm148_vm5, %v138_v1, 2102212464  ;;  %v153_v6 = vsel %vm145_vm4, %v132_v63, %v135_v0  ;;  %v157_v7 = vsel %vm145_vm4, %v135_v0, %v138_v1  ;;  %v154_v9 = vsel %vm148_vm5, %v141_v2, 920167782 }
  0xc0   :  { %v158_v10 = vsel %vm148_vm5, %v144_v3, 1326507024  ;;  %v155_v11 = vsel %vm147_vm6, %v138_v1, %v154_v9  ;;  %v149_v14 = vsel %vm145_vm4, %v129_v8, %v132_v63  ;;  %v151_v15 = vsel %vm147_vm6, %v135_v0, %v150_v4  ;;  %v326_v1 = vld [vmem:[#allocation4 + $0x58] sm:$0xff]  ;;  %v324_v3 = vld [vmem:[#allocation4 + $0x48] sm:$0xff]  ;;  %v323_v4 = vld [vmem:[#allocation4 + $0x40] sm:$0xff] }
  0xc1   :  { %v159_v12 = vsel %vm147_vm6, %v141_v2, %v158_v10  ;;  %v156_v16 = vsel %vm146_vm7, %v153_v6, %v155_v11  ;;  %v152_v22 = vsel %vm146_vm7, %v149_v14, %v151_v15  ;;  %859 = vmatpush3.msra.mxu1 %v326_v1  ;;  %v325_v2 = vld [vmem:[#allocation4 + $0x50] sm:$0xff]  ;;  %v319_v8 = vld [vmem:[#allocation4 + $0x20] sm:$0xff]  ;;  %v318_v9 = vld [vmem:[#allocation4 + $0x18] sm:$0xff] }
  0xc2   :  { %v160_v17 = vsel %vm146_vm7, %v157_v7, %v159_v12  ;;  %v1209_v20 = vmul.u32.u64.low %v161_v13, %v156_v16  ;;  %v1210_v21 = vmul.u32.u64.high %v161_v13, %v156_v16, %v1209_v20  ;;  %v168_v24 = vmul.u32 %v161_v13, %v152_v22  ;;  %860 = vmatprep.subr.mxu1 %v1098_v5  ;;  %v321_v6 = vld [vmem:[#allocation4 + $0x30] sm:$0xff]  ;;  %v320_v7 = vld [vmem:[#allocation4 + $0x28] sm:$0xff]  ;;  %v315_v12 = vld [vmem:[#allocation4] sm:$0xff] }
  0xc3   :  { %v1206_v18 = vmul.u32.u64.low %v161_v13, %v160_v17  ;;  %v1207_v19 = vmul.u32.u64.high %v161_v13, %v160_v17, %v1206_v18  ;;  %861 = vmatpush3.msra.mxu1 %v325_v2  ;;  %v317_v10 = vld [vmem:[#allocation4 + $0x10] sm:$0xff]  ;;  %v316_v11 = vld [vmem:[#allocation4 + $0x8] sm:$0xff]  ;;  %v430_v13 = vld [vmem:[#allocation4 + $0xf8] sm:$0xff] }
  0xc4   :  { %v171_v23 = vadd.s32 1, %v1210_v21  ;;  %862 = vmatprep.subr.mxu1 %v1098_v5  ;;  %v429_v14 = vld [vmem:[#allocation4 + $0xf0] sm:$0xff]  ;;  %v428_v15 = vld [vmem:[#allocation4 + $0xe8] sm:$0xff]  ;;  %v723_v16 = vld [vmem:[%s1307_s4] ss:$0 sm:$0xff] }
  0xc5   :  { %vm170_vm8 = vc.u32 %v1207_v19, %v1209_v20  ;;  %v169_v37 = vadd.s32 %v1209_v20, %v1207_v19  ;;  %863 = vmatpush3.msra.mxu1 %v324_v3  ;;  %v631_v1 = vld [vmem:[#allocation6 + $0x78] sm:$0xff]  ;;  %v630_v2 = vld [vmem:[#allocation6 + $0x70] sm:$0xff]  ;;  %v629_v3 = vld [vmem:[#allocation6 + $0x68] sm:$0xff] }
  0xc6   :  { %v172_v25 = vsel %vm170_vm8, %v171_v23, %v1210_v21  ;;  %864 = vmatprep.subr.mxu1 %v1098_v5 }
  0xc7   :  { %v173_v26 = vadd.s32 %v172_v25, %v168_v24  ;;  %865 = vmatpush3.msra.mxu1 %v323_v4  ;;  %v427_v25 = vld [vmem:[#allocation4 + $0xe0] sm:$0xff] }
  0xc8   :  { %866 = vmatprep.subr.mxu1 %v1098_v5  ;;  %v726_v4 = vld [vmem:[%s1309_s6 + $0x1] ss:$0 sm:$0xff] }
  0xc9   :  { %v174_v27 = vadd.s32 536870912, %v173_v26 }
  0xcb   :  { %v175_v28 = vshrl.u32 %v174_v27, 30  ;;  %v425_v27 = vld [vmem:[#allocation4 + $0xd0] sm:$0xff] }
  0xcd   :  { %v176_v29 = vshll.u32 %v175_v28, 30  ;;  %v199_v51 = vsub.s32 4, %v175_v28 }
  0xcf   :  { %v177_v30 = vsub.s32 %v173_v26, %v176_v29  ;;  %v200_v54 = vsel %vm115_vm10, %v199_v51, %v175_v28  ;;  %v426_v26 = vld [vmem:[#allocation4 + $0xd8] sm:$0xff]  ;;  %v424_v28 = vld [vmem:[#allocation4 + $0xc8] sm:$0xff]  ;;  %v423_v29 = vld [vmem:[#allocation4 + $0xc0] sm:$0xff] }
  0xd0   :  { %v202_v55 = vsel %vm114_vm11, 0, %v200_v54  ;;  %v527_v54 = vld [vmem:[#allocation4 + $0x158] sm:$0xff] }
  0xd1   :  { %v179_v31 = vsub.s32 0, %v177_v30  ;;  %v206_v56 = vadd.s32 3, %v202_v55  ;;  %v526_v55 = vld [vmem:[#allocation4 + $0x150] sm:$0xff] }
  0xd3   :  { %v720_v32 = vmin.u32 %v179_v31, %v177_v30  ;;  %v207_v57 = vand.u32 3, %v206_v56  ;;  %v421_v31 = vld [vmem:[#allocation4 + $0xb0] sm:$0xff]  ;;  %v525_v56 = vld [vmem:[#allocation4 + $0x148] sm:$0xff] }
  0xd5   :  { %v181_v33 = vclz %v720_v32  ;;  %vm212_vm12 = vcmp.eq.s32.totalorder %v207_v57, 2  ;;  %vm209_vm13 = vcmp.eq.s32.totalorder %v207_v57, 0  ;;  %vm208_vm14 = vcmp.lt.s32.totalorder %v207_v57, 2  ;;  %v420_v32 = vld [vmem:[#allocation4 + $0xa8] sm:$0xff]  ;;  %v524_v57 = vld [vmem:[#allocation4 + $0x140] sm:$0xff] }
  0xd7   :  { %v721_v34 = vadd.s32 4294967294, %v181_v33  ;;  %v419_v33 = vld [vmem:[#allocation4 + $0xa0] sm:$0xff] }
  0xd9   :  { %vm722_vm9 = vcmp.lt.s32.totalorder %v721_v34, 0 }
  0xda   :  { %v184_v36 = vsel %vm722_vm9, 0, %v721_v34  ;;  %v418_v34 = vld [vmem:[#allocation4 + $0x98] sm:$0xff] }
  0xdb   :  { %v185_v38 = vsub.s32 32, %v184_v36  ;;  %v189_v39 = vsub.s32 4294967266, %v184_v36  ;;  %v186_v41 = vshll.u32 %v177_v30, %v184_v36  ;;  %v422_v30 = vld [vmem:[#allocation4 + $0xb8] sm:$0xff]  ;;  %v417_v36 = vld [vmem:[#allocation4 + $0x90] sm:$0xff] }
  0xdd   :  { %v187_v42 = vshrl.u32 %v169_v37, %v185_v38  ;;  %v190_v43 = vadd.s32 127, %v189_v39  ;;  %v416_v37 = vld [vmem:[#allocation4 + $0x88] sm:$0xff]  ;;  %v415_v38 = vld [vmem:[#allocation4 + $0x80] sm:$0xff]  ;;  %v531_v39 = vld [vmem:[#allocation4 + $0x178] sm:$0xff] }
  0xdf   :  { %v188_v44 = vor.u32 %v187_v42, %v186_v41  ;;  %v191_v45 = vshll.u32 %v190_v43, 23  ;;  %v530_v41 = vld [vmem:[#allocation4 + $0x170] sm:$0xff]  ;;  %v529_v42 = vld [vmem:[#allocation4 + $0x168] sm:$0xff]  ;;  %v724_v43 = vld [vmem:[%s1309_s6] ss:$0 sm:$0xff] }
  0xe1   :  { %v192_v46 = vor.u32 4788187, %v191_v45  ;;  %v195_v48 = vcvt.s32.f32 %v188_v44 }
  0xe3   :  { %v193_v47 = vand.u32 2147483647, %v192_v46 }
  0xe5   :  { %v196_v49 = vmul.f32 %v195_v48, %v193_v47 }
  0xe7   :  { %v197_v50 = vxor.u32 2147483648, %v196_v49 }
  0xe9   :  { %v198_v52 = vsel %vm115_vm10, %v197_v50, %v196_v49 }
  0xea   :  { %v201_v53 = vsel %vm114_vm11, %v1200_v35, %v198_v52  ;;  %v322_v35 = vld [vmem:[#allocation4 + $0x38] sm:$0xff] }
  0xeb   :  { %1014 = vcosq.f32 %v201_v53  ;;  %867 = vmatpush3.msra.mxu1 %v322_v35 }
  0xec   :  { %1016 = vsinq.f32 %v201_v53  ;;  %868 = vmatprep.subr.mxu1 %v1098_v5  ;;  %v528_v53 = vld [vmem:[#allocation4 + $0x160] sm:$0xff] }
  0xed   :  { %869 = vmatpush3.msra.mxu1 %v321_v6 }
  0xee   :  { %870 = vmatprep.subr.mxu1 %v1098_v5 }
  0xef   :  { %871 = vmatpush3.msra.mxu1 %v320_v7 }
  0xf0   :  { %872 = vmatprep.subr.mxu1 %v1098_v5 }
  0xf1   :  { %873 = vmatpush3.msra.mxu1 %v319_v8 }
  0xf2   :  { %874 = vmatprep.subr.mxu1 %v1098_v5 }
  0xf3   :  { %875 = vmatpush3.msra.mxu1 %v318_v9 }
  0xf4   :  { %876 = vmatprep.subr.mxu1 %v1098_v5 }
  0xf5   :  { %877 = vmatpush3.msra.mxu1 %v317_v10 }
  0xf6   :  { %878 = vmatprep.subr.mxu1 %v1098_v5 }
  0xf7   :  { %879 = vmatpush3.msra.mxu1 %v316_v11 }
  0xf8   :  { %v1015_v58 = vpop.eup %1014  ;;  %880 = vmatprep.subr.mxu1 %v1098_v5 }
  0xf9   :  { %v1017_v59 = vpop.eup %1016  ;;  %v213_v60 = vxor.u32 2147483648, %v1015_v58  ;;  %881 = vmatpush3.msra.mxu1 %v315_v12 }
  0xfa   :  { %v210_v61 = vxor.u32 2147483648, %v1017_v59  ;;  %920 = vmatprep.subr.mxu1 %v1098_v5 }
  0xfb   :  { %v214_v62 = vsel %vm212_vm12, %v213_v60, %v1017_v59  ;;  %v522_v59 = vld [vmem:[#allocation4 + $0x130] sm:$0xff]  ;;  %v521_v60 = vld [vmem:[#allocation4 + $0x128] sm:$0xff] }
  0xfc   :  { %v211_v63 = vsel %vm209_vm13, %v1015_v58, %v210_v61  ;;  %v523_v58 = vld [vmem:[#allocation4 + $0x138] sm:$0xff]  ;;  %v520_v61 = vld [vmem:[#allocation4 + $0x120] sm:$0xff] }
  0xfd   :  { %v215_v40 = vsel %vm208_vm14, %v211_v63, %v214_v62  ;;  %v519_v62 = vld [vmem:[#allocation4 + $0x118] sm:$0xff]  ;;  %v518_v63 = vld [vmem:[#allocation4 + $0x110] sm:$0xff] }
  0xfe   :  { %v216_v0 = vsel %vm205_vm15, nan, %v215_v40  ;;  %v517_v40 = vld [vmem:[#allocation4 + $0x108] sm:$0xff] }
  0xff   :  { %848 = vmatmul.mubr.f32.vlgmr.msra.gmra.mxu0 %v216_v0  ;;  %v516_v0 = vld [vmem:[#allocation4 + $0x100] sm:$0xff] }
 0x100   :  { %917 = vmatprep.mubr.msk.f32.mxu0 %vm1099_vm0, %v1098_v5  ;;  %886 = vmatpush3.msra.mxu0 %v430_v13 }
 0x101   :  { %887 = vmatprep.subr.mxu0 %v1098_v5 }
 0x102   :  { %888 = vmatpush3.msra.mxu0 %v429_v14  ;;  %v628_v14 = vld [vmem:[#allocation6 + $0x60] sm:$0xff] }
 0x103   :  { %889 = vmatprep.subr.mxu0 %v1098_v5 }
 0x104   :  { %890 = vmatpush3.msra.mxu0 %v428_v15  ;;  %v627_v15 = vld [vmem:[#allocation6 + $0x58] sm:$0xff] }
 0x105   :  { %891 = vmatprep.subr.mxu0 %v1098_v5 }
 0x106   :  { %892 = vmatpush3.msra.mxu0 %v427_v25  ;;  %v617_v25 = vld [vmem:[#allocation6 + $0x8] sm:$0xff] }
 0x107   :  { %893 = vmatprep.subr.mxu0 %v1098_v5 }
 0x108   :  { %894 = vmatpush3.msra.mxu0 %v426_v26  ;;  %v616_v26 = vld [vmem:[#allocation6] sm:$0xff] }
 0x109   :  { %895 = vmatprep.subr.mxu0 %v1098_v5 }
 0x10a   :  { %896 = vmatpush3.msra.mxu0 %v425_v27  ;;  %v728_v27 = vld [vmem:[%s1309_s6 + $0x2] ss:$0 sm:$0xff] }
 0x10b   :  { %897 = vmatprep.subr.mxu0 %v1098_v5 }
 0x10c   :  { %898 = vmatpush3.msra.mxu0 %v424_v28 }
 0x10d   :  { %899 = vmatprep.subr.mxu0 %v1098_v5 }
 0x10e   :  { %900 = vmatpush3.msra.mxu0 %v423_v29 }
 0x10f   :  { %901 = vmatprep.subr.mxu0 %v1098_v5 }
 0x110   :  { %902 = vmatpush3.msra.mxu0 %v422_v30 }
 0x111   :  { %903 = vmatprep.subr.mxu0 %v1098_v5 }
 0x112   :  { %904 = vmatpush3.msra.mxu0 %v421_v31 }
 0x113   :  { %905 = vmatprep.subr.mxu0 %v1098_v5 }
 0x114   :  { %906 = vmatpush3.msra.mxu0 %v420_v32 }
 0x115   :  { %907 = vmatprep.subr.mxu0 %v1098_v5 }
 0x116   :  { %908 = vmatpush3.msra.mxu0 %v419_v33 }
 0x117   :  { %909 = vmatprep.subr.mxu0 %v1098_v5 }
 0x118   :  { %910 = vmatpush3.msra.mxu0 %v418_v34 }
 0x119   :  { %911 = vmatprep.subr.mxu0 %v1098_v5 }
 0x11a   :  { %912 = vmatpush3.msra.mxu0 %v417_v36 }
 0x11b   :  { %913 = vmatprep.subr.mxu0 %v1098_v5 }
 0x11c   :  { %914 = vmatpush3.msra.mxu0 %v416_v37 }
 0x11d   :  { %915 = vmatprep.subr.mxu0 %v1098_v5 }
 0x11e   :  { %916 = vmatpush3.msra.mxu0 %v415_v38 }
 0x11f   :  { %955 = vmatprep.subr.mxu0 %v1098_v5 }
 0x1bf   :  { %v306_v17 = vpop.f32.mrf.mxu0 }
 0x1c0   :  { %v307_v18 = vadd.f32 %v723_v16, %v306_v17  ;;  %v626_v16 = vld [vmem:[#allocation6 + $0x50] sm:$0xff]  ;;  %v625_v17 = vld [vmem:[#allocation6 + $0x48] sm:$0xff] }
 0x1c1   :  { %v849_v19 = vpop.f32.mrf.mxu0 }
 0x1c2   :  { %v311_v20 = vmul.f32 0.70710677, %v307_v18  ;;  %v310_v22 = vmul.f32 0.5, %v307_v18  ;;  %v624_v18 = vld [vmem:[#allocation6 + $0x40] sm:$0xff]  ;;  %v623_v19 = vld [vmem:[#allocation6 + $0x38] sm:$0xff] }
 0x1c4   :  { %1018 = verf.f32 %v311_v20  ;;  %v622_v20 = vld [vmem:[#allocation6 + $0x30] sm:$0xff] }
 0x1d1   :  { %v1019_v21 = vpop.eup %1018 }
 0x1d2   :  { %v313_v23 = vadd.f32 1.0, %v1019_v21  ;;  %v621_v21 = vld [vmem:[#allocation6 + $0x28] sm:$0xff] }
 0x1d4   :  { %v314_v24 = vmul.f32 %v313_v23, %v310_v22  ;;  %v620_v22 = vld [vmem:[#allocation6 + $0x20] sm:$0xff]  ;;  %v619_v23 = vld [vmem:[#allocation6 + $0x18] sm:$0xff] }
 0x1d6   :  { %883 = vmatmul.mubr.f32.vlgmr.msra.gmra.mxu1 %v314_v24 }
 0x1d7   :  { %952 = vmatprep.mubr.msk.f32.mxu1 %vm1099_vm0, %v1098_v5  ;;  %921 = vmatpush3.msra.mxu1 %v531_v39 }
 0x1d8   :  { %922 = vmatprep.subr.mxu1 %v1098_v5 }
 0x1d9   :  { %923 = vmatpush3.msra.mxu1 %v530_v41 }
 0x1da   :  { %924 = vmatprep.subr.mxu1 %v1098_v5 }
 0x1db   :  { %925 = vmatpush3.msra.mxu1 %v529_v42 }
 0x1dc   :  { %926 = vmatprep.subr.mxu1 %v1098_v5 }
 0x1dd   :  { %927 = vmatpush3.msra.mxu1 %v528_v53 }
 0x1de   :  { %928 = vmatprep.subr.mxu1 %v1098_v5 }
 0x1df   :  { %929 = vmatpush3.msra.mxu1 %v527_v54 }
 0x1e0   :  { %930 = vmatprep.subr.mxu1 %v1098_v5 }
 0x1e1   :  { %931 = vmatpush3.msra.mxu1 %v526_v55 }
 0x1e2   :  { %932 = vmatprep.subr.mxu1 %v1098_v5 }
 0x1e3   :  { %933 = vmatpush3.msra.mxu1 %v525_v56 }
 0x1e4   :  { %934 = vmatprep.subr.mxu1 %v1098_v5 }
 0x1e5   :  { %935 = vmatpush3.msra.mxu1 %v524_v57 }
 0x1e6   :  { %936 = vmatprep.subr.mxu1 %v1098_v5 }
 0x1e7   :  { %937 = vmatpush3.msra.mxu1 %v523_v58 }
 0x1e8   :  { %938 = vmatprep.subr.mxu1 %v1098_v5 }
 0x1e9   :  { %939 = vmatpush3.msra.mxu1 %v522_v59 }
 0x1ea   :  { %940 = vmatprep.subr.mxu1 %v1098_v5 }
 0x1eb   :  { %941 = vmatpush3.msra.mxu1 %v521_v60 }
 0x1ec   :  { %942 = vmatprep.subr.mxu1 %v1098_v5 }
 0x1ed   :  { %943 = vmatpush3.msra.mxu1 %v520_v61 }
 0x1ee   :  { %944 = vmatprep.subr.mxu1 %v1098_v5 }
 0x1ef   :  { %945 = vmatpush3.msra.mxu1 %v519_v62 }
 0x1f0   :  { %946 = vmatprep.subr.mxu1 %v1098_v5 }
 0x1f1   :  { %947 = vmatpush3.msra.mxu1 %v518_v63 }
 0x1f2   :  { %948 = vmatprep.subr.mxu1 %v1098_v5 }
 0x1f3   :  { %949 = vmatpush3.msra.mxu1 %v517_v40 }
 0x1f4   :  { %950 = vmatprep.subr.mxu1 %v1098_v5 }
 0x1f5   :  { %951 = vmatpush3.msra.mxu1 %v516_v0 }
 0x296   :  { %v404_v44 = vpop.f32.mrf.mxu1 }
 0x297   :  { %v405_v45 = vadd.f32 %v724_v43, %v404_v44 }
 0x298   :  { %v884_v46 = vpop.f32.mrf.mxu1 }
 0x299   :  { %v409_v47 = vmul.f32 0.70710677, %v405_v45  ;;  %v408_v49 = vmul.f32 0.5, %v405_v45 }
 0x29b   :  { %1020 = verf.f32 %v409_v47 }
 0x2a8   :  { %v1021_v48 = vpop.eup %1020 }
 0x2a9   :  { %v411_v50 = vadd.f32 1.0, %v1021_v48 }
 0x2ab   :  { %v412_v51 = vmul.f32 %v411_v50, %v408_v49 }
 0x2ad   :  { %v413_v52 = vadd.f32 %v412_v51, %v314_v24  ;;  %v618_v24 = vld [vmem:[#allocation6 + $0x10] sm:$0xff] }
 0x2af   :  { %918 = vmatmul.mubr.f32.vlgmr.msra.gmra.mxu0 %v413_v52 }
 0x2b0   :  { %987 = vmatprep.mubr.msk.f32.mxu0 %vm1099_vm0, %v1098_v5  ;;  %956 = vmatpush3.msra.mxu0 %v631_v1  ;;  %vm709_vm0 = vcmask 64512  }
 0x2b1   :  { %957 = vmatprep.subr.mxu0 %v1098_v5 }
 0x2b2   :  { %958 = vmatpush3.msra.mxu0 %v630_v2 }
 0x2b3   :  { %959 = vmatprep.subr.mxu0 %v1098_v5 }
 0x2b4   :  { %960 = vmatpush3.msra.mxu0 %v629_v3 }
 0x2b5   :  { %961 = vmatprep.subr.mxu0 %v1098_v5 }
 0x2b6   :  { %962 = vmatpush3.msra.mxu0 %v628_v14 }
 0x2b7   :  { %963 = vmatprep.subr.mxu0 %v1098_v5 }
 0x2b8   :  { %964 = vmatpush3.msra.mxu0 %v627_v15 }
 0x2b9   :  { %965 = vmatprep.subr.mxu0 %v1098_v5 }
 0x2ba   :  { %966 = vmatpush3.msra.mxu0 %v626_v16 }
 0x2bb   :  { %967 = vmatprep.subr.mxu0 %v1098_v5 }
 0x2bc   :  { %968 = vmatpush3.msra.mxu0 %v625_v17 }
 0x2bd   :  { %969 = vmatprep.subr.mxu0 %v1098_v5 }
 0x2be   :  { %970 = vmatpush3.msra.mxu0 %v624_v18 }
 0x2bf   :  { %971 = vmatprep.subr.mxu0 %v1098_v5 }
 0x2c0   :  { %972 = vmatpush3.msra.mxu0 %v623_v19 }
 0x2c1   :  { %973 = vmatprep.subr.mxu0 %v1098_v5 }
 0x2c2   :  { %974 = vmatpush3.msra.mxu0 %v622_v20 }
 0x2c3   :  { %975 = vmatprep.subr.mxu0 %v1098_v5 }
 0x2c4   :  { %976 = vmatpush3.msra.mxu0 %v621_v21 }
 0x2c5   :  { %977 = vmatprep.subr.mxu0 %v1098_v5 }
 0x2c6   :  { %978 = vmatpush3.msra.mxu0 %v620_v22 }
 0x2c7   :  { %979 = vmatprep.subr.mxu0 %v1098_v5 }
 0x2c8   :  { %980 = vmatpush3.msra.mxu0 %v619_v23 }
 0x2c9   :  { %981 = vmatprep.subr.mxu0 %v1098_v5 }
 0x2ca   :  { %982 = vmatpush3.msra.mxu0 %v618_v24 }
 0x2cb   :  { %983 = vmatprep.subr.mxu0 %v1098_v5 }
 0x2cc   :  { %984 = vmatpush3.msra.mxu0 %v617_v25 }
 0x2cd   :  { %985 = vmatprep.subr.mxu0 %v1098_v5  ;;  %v729_v5 = vld [vmem:[%s1311_s8] ss:$0 sm:$0xff] }
 0x2ce   :  { %986 = vmatpush3.msra.mxu0 %v616_v26 }
 0x36f   :  { %v505_v35 = vpop.f32.mrf.mxu0 }
 0x370   :  { %v506_v6 = vadd.f32 %v726_v4, %v505_v35 }
 0x371   :  { %v919_v7 = vpop.f32.mrf.mxu0 }
 0x372   :  { %v510_v8 = vmul.f32 0.70710677, %v506_v6  ;;  %v509_v10 = vmul.f32 0.5, %v506_v6 }
 0x374   :  { %1022 = verf.f32 %v510_v8 }
 0x381   :  { %v1023_v9 = vpop.eup %1022 }
 0x382   :  { %v512_v11 = vadd.f32 1.0, %v1023_v9 }
 0x384   :  { %v513_v12 = vmul.f32 %v512_v11, %v509_v10 }
 0x386   :  { %v514_v13 = vadd.f32 %v513_v12, %v413_v52 }
 0x388   :  { %953 = vmatmul.mubr.f32.vlgmr.msra.gmra.mxu1 %v514_v13 }
 0x448   :  { %v606_v28 = vpop.f32.mrf.mxu1 }
 0x449   :  { %v607_v29 = vadd.f32 %v728_v27, %v606_v28 }
 0x44a   :  { %v954_v30 = vpop.f32.mrf.mxu1 }
 0x44b   :  { %v611_v31 = vmul.f32 0.70710677, %v607_v29  ;;  %v610_v33 = vmul.f32 0.5, %v607_v29 }
 0x44d   :  { %1024 = verf.f32 %v611_v31 }
 0x45a   :  { %v1025_v32 = vpop.eup %1024 }
 0x45b   :  { %v613_v34 = vadd.f32 1.0, %v1025_v32 }
 0x45d   :  { %v614_v36 = vmul.f32 %v613_v34, %v610_v33 }
 0x45f   :  { %v615_v37 = vadd.f32 %v614_v36, %v514_v13 }
 0x461   :  { %988 = vmatmul.mubr.f32.vlgmr.msra.gmra.mxu0 %v615_v37 }
 0x521   :  { %v705_v38 = vpop.f32.mrf.mxu0 }
 0x522   :  { %v706_v39 = vadd.f32 %v729_v5, %v705_v38 }
 0x523   :  { %v989_v41 = vpop.f32.mrf.mxu0 }
 0x524   :  { %710 = vst.msk [vmem:[%s1312_s9] sm:$0xff] %vm709_vm0, %v706_v39 }
 0x525   :  { %715 = vsyncpa [#allocation3], 1 }
 0x526   :  { %716 = vsyncpa [#allocation5], 1 }

</bundles_post_ra>
